<compile_context>
chip_gen: v7x
topology: tpu7x:2x2x1
jax: 0.10.0
libtpu: 0.0.40
codegen_flags: <defaults>
</compile_context>

<pallas_src>
import functools

import jax
import jax.numpy as jnp
from jax.experimental import pallas as pl
from jax.experimental.pallas import tpu as pltpu

LANE = 128
N_WBLK = 8                      # 8 x 128-lane weight column blocks -> (128, 1024) slab

LAYER_ORDER = ("enc1", "enc", "mu", "lv", "z", "z1", "dec")
LAYER_DIMS = {
    "enc1": (22, 20),
    "enc": (20, 15),
    "mu": (15, 15),
    "lv": (15, 15),
    "z": (15, 15),
    "z1": (15, 20),
    "dec": (20, 22),
}

# Lane layout of the packed slabs.
#   input  (B, 128):  x -> lanes [0,22)          eps -> lanes [64,79)
#   output (B, 256):  block0 = enc_1@0 | enc@32 | mu@64 | log_var@96
#                     block1 = z_1@0   | z@32   | o@64  | dec@96
X_OFF, EPS_OFF = 0, 64

# Weight placement inside the (128, 8*128) slab:
#   (param name, row offset = lane offset of that layer's input,
#    slab column offset = block*128 + lane offset of that layer's output)
_W_PLACEMENTS = (
    ("enc1", X_OFF, 0 * LANE + 0),    # x(22)@0        -> enc_1(20)@0
    ("enc",  0,     1 * LANE + 32),   # tanh(enc_1)@0  -> enc(15)@32
    ("mu",   32,    2 * LANE + 64),   # enc@32         -> mu(15)@64
    ("lv",   32,    3 * LANE + 96),   # enc@32         -> log_var(15)@96  (output copy)
    ("lv",   32,    4 * LANE + 64),   # enc@32         -> log_var(15)@64  (reparam copy)
    ("z",    64,    5 * LANE + 32),   # o@64           -> z(15)@32
    ("z1",   32,    6 * LANE + 0),    # tanh(z)@32     -> z_1(20)@0
    ("dec",  0,     7 * LANE + 96),   # tanh(z_1)@0    -> dec(22)@96
)

# (start lane in the packed (B, 256) output slab, valid width) per result.
_OUT_SLOTS = {
    "enc_1":   (0, 20),
    "enc":     (32, 15),
    "mu":      (64, 15),
    "log_var": (96, 15),
    "z_1":     (LANE + 0, 20),
    "z":       (LANE + 32, 15),
    "o":       (LANE + 64, 15),
    "dec":     (LANE + 96, 22),
}
_RETURN_ORDER = ("enc_1", "enc", "mu", "log_var", "o", "z", "z_1", "dec")


def _vae_kernel(xin_ref, w_ref, b_ref, out_ref):
    f32 = jnp.float32
    xin = xin_ref[...]                       # (tb, 128): x@[0,22), eps@[64,79)
    tb = xin.shape[0]
    lane = jax.lax.broadcasted_iota(jnp.int32, (tb, LANE), 1)

    def lin(v, c0, c1):
        return (jnp.dot(v, w_ref[:, c0:c1], preferred_element_type=f32)
                + b_ref[:, c0:c1])

    # Isolate eps (lanes [64,79)); x needs no mask — the eps rows of W_enc1 are zero.
    eps = jnp.where(lane >= EPS_OFF, xin, 0.0)

    enc_1 = lin(xin, 0, LANE)                               # valid lanes [0,20)
    enc = jnp.tanh(lin(jnp.tanh(enc_1), LANE, 2 * LANE))    # valid lanes [32,47)

    # Fused mu | log_var(out copy) | log_var(reparam copy): one 384-wide MXU dot.
    mulv = lin(enc, 2 * LANE, 5 * LANE)                     # (tb, 384)
    mu = mulv[:, :LANE]                                     # valid lanes [64,79)
    lv_out = mulv[:, LANE:2 * LANE]                         # valid lanes [96,111)
    lv_rp = mulv[:, 2 * LANE:]                              # valid lanes [64,79)

    # Packed output block 0: enc_1@0 | enc@32 | mu@64 | log_var@96 (disjoint lanes).
    out_ref[:, :LANE] = enc_1 + enc + mu + lv_out

    # Reparameterize: mu, log_var, eps all lane-aligned at 64; padded lanes stay 0.
    o = mu + eps * jnp.exp(lv_rp * 0.5)                     # valid lanes [64,79)

    z = lin(o, 5 * LANE, 6 * LANE)                          # valid lanes [32,47)
    z_1 = lin(jnp.tanh(z), 6 * LANE, 7 * LANE)              # valid lanes [0,20)
    dec_pre = lin(jnp.tanh(z_1), 7 * LANE, 8 * LANE)        # valid lanes [96,118)
    # sigmoid(0) = 0.5 on padded lanes -> mask before packing into a shared block.
    dec = jnp.where((lane >= 96) & (lane < 96 + 22),
                    jax.nn.sigmoid(dec_pre), 0.0)

    # Packed output block 1: z_1@0 | z@32 | o@64 | dec@96 (disjoint lanes).
    out_ref[:, LANE:] = z_1 + z + o + dec


def _pack_params(params):
    """Place every (in,out) weight / (1,out) bias at its (row, lane) offset in one slab."""
    f32 = jnp.float32
    w_all = jnp.zeros((LANE, N_WBLK * LANE), f32)
    b_all = jnp.zeros((1, N_WBLK * LANE), f32)
    for name, r_off, c_off in _W_PLACEMENTS:
        w = params[f"w_{name}"].astype(f32)
        b = params[f"b_{name}"].astype(f32)
        fi, fo = w.shape
        w_all = w_all.at[r_off:r_off + fi, c_off:c_off + fo].set(w)
        b_all = b_all.at[:, c_off:c_off + fo].set(b)
    return w_all, b_all


def _round_up8(n):
    return -(-n // 8) * 8


@functools.partial(jax.jit, static_argnames=("tile_b",))
def vae_forward(x, eps, params, *, tile_b=1024):
    """x: (B, 22) f32, eps: (B, 15) f32, params: dict of (in,out) weights / (1,out) biases."""
    f32 = jnp.float32
    B = x.shape[0]
    w_all, b_all = _pack_params(params)

    # Batch tile: multiple of 8 sublanes, capped at tile_b.  For moderate/large batches
    # force >= 2 grid steps so both v7x TensorCores get a share of the "parallel" axis.
    b8 = _round_up8(B)
    tb = min(tile_b, b8)
    if b8 >= 512:
        tb = min(tb, _round_up8(b8 // 2))
    b_pad = -(-B // tb) * tb

    # Single 128-lane packed input slab: x at lanes [0,22), eps at lanes [64,79).
    xin = jnp.zeros((b_pad, LANE), f32)
    xin = xin.at[:B, X_OFF:X_OFF + 22].set(x.astype(f32))
    xin = xin.at[:B, EPS_OFF:EPS_OFF + 15].set(eps.astype(f32))

    packed = pl.pallas_call(
        _vae_kernel,
        grid=(b_pad // tb,),
        in_specs=[
            pl.BlockSpec((tb, LANE), lambda i: (i, 0)),             # batch-tiled input
            pl.BlockSpec((LANE, N_WBLK * LANE), lambda i: (0, 0)),  # resident weights
            pl.BlockSpec((1, N_WBLK * LANE), lambda i: (0, 0)),     # resident biases
        ],
        out_specs=pl.BlockSpec((tb, 2 * LANE), lambda i: (i, 0)),   # packed lane-dense out
        out_shape=jax.ShapeDtypeStruct((b_pad, 2 * LANE), f32),
        compiler_params=pltpu.CompilerParams(
            dimension_semantics=("parallel",),     # shard batch tiles across TCs (v7x)
            vmem_limit_bytes=32 * 1024 * 1024,     # explicit; actual footprint < ~12 MiB
        ),
    )(xin, w_all, b_all)

    # Slice the 8 results out of the packed slab.  Consumers that accept the packed
    # layout can use packed[:B] directly and skip these copies.
    return tuple(packed[:B, s:s + w]
                 for s, w in (_OUT_SLOTS[name] for name in _RETURN_ORDER))


def init_params(key):
    """Deterministic init mimicking PyTorch's default Linear init (uniform +-1/sqrt(fan_in)).

    Weights are stored as (in, out); biases as (1, out).
    """
    params = {}
    keys = jax.random.split(key, 2 * len(LAYER_ORDER))
    for i, name in enumerate(LAYER_ORDER):
        fan_in, fan_out = LAYER_DIMS[name]
        bound = 1.0 / (fan_in ** 0.5)
        wk, bk = keys[2 * i], keys[2 * i + 1]
        params[f"w_{name}"] = jax.random.uniform(
            wk, (fan_in, fan_out), jnp.float32, -bound, bound
        )
        params[f"b_{name}"] = jax.random.uniform(
            bk, (1, fan_out), jnp.float32, -bound, bound
        )
    return params


def vae_reference(x, eps, params):
    """Pure-JAX reference matching the PyTorch forward."""
    def lin(v, name):
        return v @ params[f"w_{name}"] + params[f"b_{name}"]

    enc_1 = lin(x, "enc1")
    enc = jnp.tanh(lin(jnp.tanh(enc_1), "enc"))
    mu = lin(enc, "mu")
    log_var = lin(enc, "lv")
    o = mu + eps * jnp.exp(log_var / 2)
    z = lin(o, "z")
    z_1 = lin(jnp.tanh(z), "z1")
    dec = jax.nn.sigmoid(lin(jnp.tanh(z_1), "dec"))
    return enc_1, enc, mu, log_var, o, z, z_1, dec


if __name__ == "__main__":
    key = jax.random.PRNGKey(0)
    kx, keps, kparams = jax.random.split(key, 3)
    params = init_params(kparams)

    # (batch, tile) cases: single-tile small batch, and a 3-step grid exercising tiling.
    for B, tb in ((8, 1024), (96, 32)):
        x = jax.random.normal(kx, (B, 22), jnp.float32)
        eps = jax.random.normal(keps, (B, 15), jnp.float32)  # torch.randn_like(std)

        outs = jax.block_until_ready(vae_forward(x, eps, params, tile_b=tb))
        refs = vae_reference(x, eps, params)

        for name, got, want in zip(_RETURN_ORDER, outs, refs):
            assert got.shape == want.shape, (name, got.shape, want.shape)
            if not jnp.allclose(got, want, atol=1e-5, rtol=1e-5):
                raise AssertionError(f"mismatch in {name} (B={B})")

    print("KERNEL_OK")
</pallas_src>

<mosaic_0001>
module attributes {stable_mosaic.version = 11 : i64} {
  func.func @_vae_kernel(%arg0: i32, %arg1: memref<8x128xf32, #tpu.memory_space<vmem>>, %arg2: memref<128x1024xf32, #tpu.memory_space<vmem>>, %arg3: memref<1x1024xf32, #tpu.memory_space<vmem>>, %arg4: memref<8x256xf32, #tpu.memory_space<vmem>>) attributes {dimension_semantics = [#tpu.dimension_semantics<parallel>], iteration_bounds = array<i64: 1>, scalar_prefetch = 0 : i64, scratch_operands = 0 : i64, tpu.core_type = #tpu.core_type<tc>, window_params = [{transform_indices = @transform_0, window_bounds = array<i64: 8, 128>}, {pipeline_mode = #tpu.pipeline_mode<synchronous>, transform_indices = @transform_1, window_bounds = array<i64: 128, 1024>}, {pipeline_mode = #tpu.pipeline_mode<synchronous>, transform_indices = @transform_2, window_bounds = array<i64: 1, 1024>}, {transform_indices = @transform_3, window_bounds = array<i64: 8, 256>}]} {
    %c0 = arith.constant 0 : index
    %c0_0 = arith.constant 0 : index
    %0 = vector.load %arg1[%c0, %c0_0] : memref<8x128xf32, #tpu.memory_space<vmem>>, vector<8x128xf32>
    %1 = tpu.iota {dimensions = array<i32: 1>} : vector<8x128xi32>
    %c64_i32 = arith.constant 64 : i32
    %2 = vector.broadcast %c64_i32 : i32 to vector<8x128xi32>
    %3 = arith.cmpi sge, %1, %2 : vector<8x128xi32>
    %cst = arith.constant 0.000000e+00 : f32
    %4 = vector.broadcast %cst : f32 to vector<8x128xf32>
    %5 = arith.select %3, %0, %4 : vector<8x128xi1>, vector<8x128xf32>
    %c0_1 = arith.constant 0 : index
    %c0_2 = arith.constant 0 : index
    %6 = vector.load %arg2[%c0_1, %c0_2] : memref<128x1024xf32, #tpu.memory_space<vmem>>, vector<128x128xf32>
    %cst_3 = arith.constant dense<0.000000e+00> : vector<8x128xf32>
    %7 = tpu.matmul %0, %6, %cst_3 {dimension_numbers = #tpu.dot_dimension_numbers<[1], [0], [0], [1], [0, 0, 1, 1], [], []>} : vector<8x128xf32>, vector<128x128xf32>, vector<8x128xf32> -> vector<8x128xf32>
    %c0_4 = arith.constant 0 : index
    %c0_5 = arith.constant 0 : index
    %8 = vector.load %arg3[%c0_4, %c0_5] : memref<1x1024xf32, #tpu.memory_space<vmem>>, vector<1x128xf32>
    %9 = vector.broadcast %8 : vector<1x128xf32> to vector<8x128xf32>
    %10 = arith.addf %7, %9 : vector<8x128xf32>
    %11 = math.tanh %10 : vector<8x128xf32>
    %c0_6 = arith.constant 0 : index
    %c128 = arith.constant 128 : index
    %12 = vector.load %arg2[%c0_6, %c128] : memref<128x1024xf32, #tpu.memory_space<vmem>>, vector<128x128xf32>
    %cst_7 = arith.constant dense<0.000000e+00> : vector<8x128xf32>
    %13 = tpu.matmul %11, %12, %cst_7 {dimension_numbers = #tpu.dot_dimension_numbers<[1], [0], [0], [1], [0, 0, 1, 1], [], []>} : vector<8x128xf32>, vector<128x128xf32>, vector<8x128xf32> -> vector<8x128xf32>
    %c0_8 = arith.constant 0 : index
    %c128_9 = arith.constant 128 : index
    %14 = vector.load %arg3[%c0_8, %c128_9] : memref<1x1024xf32, #tpu.memory_space<vmem>>, vector<1x128xf32>
    %15 = vector.broadcast %14 : vector<1x128xf32> to vector<8x128xf32>
    %16 = arith.addf %13, %15 : vector<8x128xf32>
    %17 = math.tanh %16 : vector<8x128xf32>
    %c0_10 = arith.constant 0 : index
    %c256 = arith.constant 256 : index
    %18 = vector.load %arg2[%c0_10, %c256] : memref<128x1024xf32, #tpu.memory_space<vmem>>, vector<128x384xf32>
    %cst_11 = arith.constant dense<0.000000e+00> : vector<8x384xf32>
    %19 = tpu.matmul %17, %18, %cst_11 {dimension_numbers = #tpu.dot_dimension_numbers<[1], [0], [0], [1], [0, 0, 1, 1], [], []>} : vector<8x128xf32>, vector<128x384xf32>, vector<8x384xf32> -> vector<8x384xf32>
    %c0_12 = arith.constant 0 : index
    %c256_13 = arith.constant 256 : index
    %20 = vector.load %arg3[%c0_12, %c256_13] : memref<1x1024xf32, #tpu.memory_space<vmem>>, vector<1x384xf32>
    %21 = vector.broadcast %20 : vector<1x384xf32> to vector<8x384xf32>
    %22 = arith.addf %19, %21 : vector<8x384xf32>
    %23 = vector.extract_strided_slice %22 {offsets = [0, 0], sizes = [8, 128], strides = [1, 1]} : vector<8x384xf32> to vector<8x128xf32>
    %24 = vector.extract_strided_slice %22 {offsets = [0, 128], sizes = [8, 128], strides = [1, 1]} : vector<8x384xf32> to vector<8x128xf32>
    %25 = vector.extract_strided_slice %22 {offsets = [0, 256], sizes = [8, 128], strides = [1, 1]} : vector<8x384xf32> to vector<8x128xf32>
    %26 = arith.addf %10, %17 : vector<8x128xf32>
    %27 = arith.addf %26, %23 : vector<8x128xf32>
    %28 = arith.addf %27, %24 : vector<8x128xf32>
    %c0_14 = arith.constant 0 : index
    %c0_15 = arith.constant 0 : index
    %29 = vector.load %arg4[%c0_14, %c0_15] : memref<8x256xf32, #tpu.memory_space<vmem>>, vector<8x128xf32>
    tpu.vector_store %arg4[%c0_14, %c0_15], %28 {strides = array<i32>} : memref<8x256xf32, #tpu.memory_space<vmem>>, vector<8x128xf32>,
    %cst_16 = arith.constant 5.000000e-01 : f32
    %30 = vector.broadcast %cst_16 : f32 to vector<8x128xf32>
    %31 = arith.mulf %25, %30 : vector<8x128xf32>
    %32 = math.exp %31 : vector<8x128xf32>
    %33 = arith.mulf %5, %32 : vector<8x128xf32>
    %34 = arith.addf %23, %33 : vector<8x128xf32>
    %c0_17 = arith.constant 0 : index
    %c640 = arith.constant 640 : index
    %35 = vector.load %arg2[%c0_17, %c640] : memref<128x1024xf32, #tpu.memory_space<vmem>>, vector<128x128xf32>
    %cst_18 = arith.constant dense<0.000000e+00> : vector<8x128xf32>
    %36 = tpu.matmul %34, %35, %cst_18 {dimension_numbers = #tpu.dot_dimension_numbers<[1], [0], [0], [1], [0, 0, 1, 1], [], []>} : vector<8x128xf32>, vector<128x128xf32>, vector<8x128xf32> -> vector<8x128xf32>
    %c0_19 = arith.constant 0 : index
    %c640_20 = arith.constant 640 : index
    %37 = vector.load %arg3[%c0_19, %c640_20] : memref<1x1024xf32, #tpu.memory_space<vmem>>, vector<1x128xf32>
    %38 = vector.broadcast %37 : vector<1x128xf32> to vector<8x128xf32>
    %39 = arith.addf %36, %38 : vector<8x128xf32>
    %40 = math.tanh %39 : vector<8x128xf32>
    %c0_21 = arith.constant 0 : index
    %c768 = arith.constant 768 : index
    %41 = vector.load %arg2[%c0_21, %c768] : memref<128x1024xf32, #tpu.memory_space<vmem>>, vector<128x128xf32>
    %cst_22 = arith.constant dense<0.000000e+00> : vector<8x128xf32>
    %42 = tpu.matmul %40, %41, %cst_22 {dimension_numbers = #tpu.dot_dimension_numbers<[1], [0], [0], [1], [0, 0, 1, 1], [], []>} : vector<8x128xf32>, vector<128x128xf32>, vector<8x128xf32> -> vector<8x128xf32>
    %c0_23 = arith.constant 0 : index
    %c768_24 = arith.constant 768 : index
    %43 = vector.load %arg3[%c0_23, %c768_24] : memref<1x1024xf32, #tpu.memory_space<vmem>>, vector<1x128xf32>
    %44 = vector.broadcast %43 : vector<1x128xf32> to vector<8x128xf32>
    %45 = arith.addf %42, %44 : vector<8x128xf32>
    %46 = math.tanh %45 : vector<8x128xf32>
    %c0_25 = arith.constant 0 : index
    %c896 = arith.constant 896 : index
    %47 = vector.load %arg2[%c0_25, %c896] : memref<128x1024xf32, #tpu.memory_space<vmem>>, vector<128x128xf32>
    %cst_26 = arith.constant dense<0.000000e+00> : vector<8x128xf32>
    %48 = tpu.matmul %46, %47, %cst_26 {dimension_numbers = #tpu.dot_dimension_numbers<[1], [0], [0], [1], [0, 0, 1, 1], [], []>} : vector<8x128xf32>, vector<128x128xf32>, vector<8x128xf32> -> vector<8x128xf32>
    %c0_27 = arith.constant 0 : index
    %c896_28 = arith.constant 896 : index
    %49 = vector.load %arg3[%c0_27, %c896_28] : memref<1x1024xf32, #tpu.memory_space<vmem>>, vector<1x128xf32>
    %50 = vector.broadcast %49 : vector<1x128xf32> to vector<8x128xf32>
    %51 = arith.addf %48, %50 : vector<8x128xf32>
    %c96_i32 = arith.constant 96 : i32
    %52 = vector.broadcast %c96_i32 : i32 to vector<8x128xi32>
    %53 = arith.cmpi sge, %1, %52 : vector<8x128xi32>
    %c118_i32 = arith.constant 118 : i32
    %54 = vector.broadcast %c118_i32 : i32 to vector<8x128xi32>
    %55 = arith.cmpi slt, %1, %54 : vector<8x128xi32>
    %56 = arith.andi %53, %55 : vector<8x128xi1>
    %57 = arith.negf %51 : vector<8x128xf32>
    %58 = math.exp %57 : vector<8x128xf32>
    %cst_29 = arith.constant 1.000000e+00 : f32
    %59 = vector.broadcast %cst_29 : f32 to vector<8x128xf32>
    %60 = arith.addf %59, %58 : vector<8x128xf32>
    %61 = arith.divf %59, %60 : vector<8x128xf32>
    %cst_30 = arith.constant 0.000000e+00 : f32
    %62 = vector.broadcast %cst_30 : f32 to vector<8x128xf32>
    %63 = arith.select %56, %61, %62 : vector<8x128xi1>, vector<8x128xf32>
    %64 = arith.addf %45, %39 : vector<8x128xf32>
    %65 = arith.addf %64, %34 : vector<8x128xf32>
    %66 = arith.addf %65, %63 : vector<8x128xf32>
    %c0_31 = arith.constant 0 : index
    %c128_32 = arith.constant 128 : index
    %67 = vector.load %arg4[%c0_31, %c128_32] : memref<8x256xf32, #tpu.memory_space<vmem>>, vector<8x128xf32>
    tpu.vector_store %arg4[%c0_31, %c128_32], %66 {strides = array<i32>} : memref<8x256xf32, #tpu.memory_space<vmem>>, vector<8x128xf32>,
    return
  }
  func.func @transform_0(%arg0: i32) -> (i32, i32) {
    %c0_i32 = arith.constant 0 : i32
    %c0_i32_0 = arith.constant 0 : i32
    return %arg0, %c0_i32 : i32, i32
  }
  func.func @transform_1(%arg0: i32) -> (i32, i32) {
    %c0_i32 = arith.constant 0 : i32
    %c0_i32_0 = arith.constant 0 : i32
    %c0_i32_1 = arith.constant 0 : i32
    return %c0_i32, %c0_i32_0 : i32, i32
  }
  func.func @transform_2(%arg0: i32) -> (i32, i32) {
    %c0_i32 = arith.constant 0 : i32
    %c0_i32_0 = arith.constant 0 : i32
    %c0_i32_1 = arith.constant 0 : i32
    return %c0_i32, %c0_i32_0 : i32, i32
  }
  func.func @transform_3(%arg0: i32) -> (i32, i32) {
    %c0_i32 = arith.constant 0 : i32
    %c0_i32_0 = arith.constant 0 : i32
    return %arg0, %c0_i32 : i32, i32
  }
}

</mosaic_0001>

<bundles_post_ra>
// kernel: vae_forward.1
= control target key start
LH: loop header
LB: loop body
LE: loop exit
PB: predicated region body
PF: predicated region fallthrough
CT: control target
= control target key end

     0   :  { %v1232_v0 = vmov 0.0|0.0   ;;  %vm1233_vm0 = vmmov 0   ;;  %v1234_v4 = vmov 0.0   ;;  %s1749_s1 = inlined_call_operand.vmem [shape: f32[128,1024], index: 1, kind: input, shape index: {}]   ;;  %s1750_s0 = inlined_call_operand.vmem [shape: f32[8,128], index: 0, kind: input, shape index: {}]   ;;  %s1751_s2 = inlined_call_operand.vmem [shape: f32[1,1024], index: 2, kind: input, shape index: {}]   ;;  %s1752_s3 = inlined_call_operand.vmem [shape: f32[8,256], index: 3, kind: output, shape index: {}]  }
   0x1   :  { %1039 = vmatprep.subr.bf16.mxu0 %v1232_v0  ;;  %v19_v1 = vld [vmem:[%s1749_s1] sm:$0xff]  ;;  %861 = vmatprep.mubr.msk.f32.mxu0 %vm1233_vm0, %v1234_v4  ;;  %v113_v10 = vld [vmem:[%s1749_s1 + $0x8] sm:$0xff]  ;;  %v208_v51 = vld [vmem:[%s1749_s1 + $0x18] sm:$0xff] }
   0x2   :  { %v20_v2 = vld [vmem:[%s1749_s1 + $0x40] sm:$0xff]  ;;  %1063 = vmatprep.subr.bf16.mxu1 %v1232_v0  ;;  %896 = vmatprep.mubr.msk.f32.mxu1 %vm1233_vm0, %v1234_v4  ;;  %v114_v11 = vld [vmem:[%s1749_s1 + $0x48] sm:$0xff]  ;;  %v211_v52 = vld [vmem:[%s1749_s1 + $0x58] sm:$0xff] }
   0x3   :  { %v21_v3 = vld [vmem:[%s1749_s1 + $0x80] sm:$0xff]  ;;  %v1040_v5 = vpack.c.bf16 %v20_v2, %v19_v1  ;;  %v115_v12 = vld [vmem:[%s1749_s1 + $0x88] sm:$0xff]  ;;  %v1064_v14 = vpack.c.bf16 %v114_v11, %v113_v10  ;;  %v207_v53 = vld [vmem:[%s1749_s1 + $0x10] sm:$0xff]  ;;  %v1087_v54 = vpack.c.bf16 %v211_v52, %v208_v51 }
   0x4   :  { %v22_v6 = vld [vmem:[%s1749_s1 + $0xc0] sm:$0xff]  ;;  %v116_v15 = vld [vmem:[%s1749_s1 + $0xc8] sm:$0xff]  ;;  %v210_v55 = vld [vmem:[%s1749_s1 + $0x50] sm:$0xff] }
   0x5   :  { %1041 = vmatpush3.bf16.msra.mxu0 %v1040_v5  ;;  %v1043_v7 = vpack.c.bf16 %v22_v6, %v21_v3  ;;  %v23_v8 = vld [vmem:[%s1749_s1 + $0x100] sm:$0xff]  ;;  %1065 = vmatpush3.bf16.msra.mxu1 %v1064_v14  ;;  %v1067_v18 = vpack.c.bf16 %v116_v15, %v115_v12  ;;  %v117_v19 = vld [vmem:[%s1749_s1 + $0x108] sm:$0xff]  ;;  %v1089_v56 = vpack.c.bf16 %v210_v55, %v207_v53  ;;  %v214_v57 = vld [vmem:[%s1749_s1 + $0x98] sm:$0xff] }
   0x6   :  { %1042 = vmatprep.subr.bf16.mxu0 %v1232_v0  ;;  %v24_v9 = vld [vmem:[%s1749_s1 + $0x140] sm:$0xff]  ;;  %1066 = vmatprep.subr.bf16.mxu1 %v1232_v0  ;;  %v118_v20 = vld [vmem:[%s1749_s1 + $0x148] sm:$0xff]  ;;  %v217_v58 = vld [vmem:[%s1749_s1 + $0xd8] sm:$0xff] }
   0x7   :  { %v1046_v13 = vpack.c.bf16 %v24_v9, %v23_v8  ;;  %v25_v16 = vld [vmem:[%s1749_s1 + $0x180] sm:$0xff]  ;;  %v1070_v24 = vpack.c.bf16 %v118_v20, %v117_v19  ;;  %v119_v25 = vld [vmem:[%s1749_s1 + $0x188] sm:$0xff]  ;;  %v213_v59 = vld [vmem:[%s1749_s1 + $0x90] sm:$0xff]  ;;  %v1091_v60 = vpack.c.bf16 %v217_v58, %v214_v57 }
   0x8   :  { %v26_v17 = vld [vmem:[%s1749_s1 + $0x1c0] sm:$0xff]  ;;  %v120_v26 = vld [vmem:[%s1749_s1 + $0x1c8] sm:$0xff]  ;;  %v216_v61 = vld [vmem:[%s1749_s1 + $0xd0] sm:$0xff] }
   0x9   :  { %1044 = vmatpush3.bf16.msra.mxu0 %v1043_v7  ;;  %v1049_v21 = vpack.c.bf16 %v26_v17, %v25_v16  ;;  %v27_v22 = vld [vmem:[%s1749_s1 + $0x200] sm:$0xff]  ;;  %1068 = vmatpush3.bf16.msra.mxu1 %v1067_v18  ;;  %v1073_v30 = vpack.c.bf16 %v120_v26, %v119_v25  ;;  %v121_v31 = vld [vmem:[%s1749_s1 + $0x208] sm:$0xff]  ;;  %v1093_v62 = vpack.c.bf16 %v216_v61, %v213_v59  ;;  %v220_v63 = vld [vmem:[%s1749_s1 + $0x118] sm:$0xff] }
   0xa   :  { %1045 = vmatprep.subr.bf16.mxu0 %v1232_v0  ;;  %v28_v23 = vld [vmem:[%s1749_s1 + $0x240] sm:$0xff]  ;;  %1069 = vmatprep.subr.bf16.mxu1 %v1232_v0  ;;  %v122_v32 = vld [vmem:[%s1749_s1 + $0x248] sm:$0xff]  ;;  %v223_v1 = vld [vmem:[%s1749_s1 + $0x158] sm:$0xff] }
   0xb   :  { %v1052_v27 = vpack.c.bf16 %v28_v23, %v27_v22  ;;  %v29_v28 = vld [vmem:[%s1749_s1 + $0x280] sm:$0xff]  ;;  %v1076_v36 = vpack.c.bf16 %v122_v32, %v121_v31  ;;  %v123_v42 = vld [vmem:[%s1749_s1 + $0x288] sm:$0xff]  ;;  %v1095_v2 = vpack.c.bf16 %v223_v1, %v220_v63  ;;  %v219_v3 = vld [vmem:[%s1749_s1 + $0x110] sm:$0xff] }
   0xc   :  { %v30_v29 = vld [vmem:[%s1749_s1 + $0x2c0] sm:$0xff]  ;;  %v124_v43 = vld [vmem:[%s1749_s1 + $0x2c8] sm:$0xff]  ;;  %v222_v5 = vld [vmem:[%s1749_s1 + $0x150] sm:$0xff] }
   0xd   :  { %1047 = vmatpush3.bf16.msra.mxu0 %v1046_v13  ;;  %1071 = vmatpush3.bf16.msra.mxu1 %v1070_v24  ;;  %v1055_v33 = vpack.c.bf16 %v30_v29, %v29_v28  ;;  %v31_v34 = vld [vmem:[%s1749_s1 + $0x300] sm:$0xff]  ;;  %v1079_v44 = vpack.c.bf16 %v124_v43, %v123_v42  ;;  %v125_v45 = vld [vmem:[%s1749_s1 + $0x308] sm:$0xff]  ;;  %v1097_v6 = vpack.c.bf16 %v222_v5, %v219_v3  ;;  %v226_v7 = vld [vmem:[%s1749_s1 + $0x198] sm:$0xff] }
   0xe   :  { %1048 = vmatprep.subr.bf16.mxu0 %v1232_v0  ;;  %1072 = vmatprep.subr.bf16.mxu1 %v1232_v0  ;;  %v32_v35 = vld [vmem:[%s1749_s1 + $0x340] sm:$0xff]  ;;  %v126_v46 = vld [vmem:[%s1749_s1 + $0x348] sm:$0xff]  ;;  %v229_v8 = vld [vmem:[%s1749_s1 + $0x1d8] sm:$0xff] }
   0xf   :  { %v1058_v37 = vpack.c.bf16 %v32_v35, %v31_v34  ;;  %v33_v38 = vld [vmem:[%s1749_s1 + $0x380] sm:$0xff]  ;;  %v1082_v47 = vpack.c.bf16 %v126_v46, %v125_v45  ;;  %v127_v48 = vld [vmem:[%s1749_s1 + $0x388] sm:$0xff]  ;;  %v1099_v9 = vpack.c.bf16 %v229_v8, %v226_v7  ;;  %v225_v10 = vld [vmem:[%s1749_s1 + $0x190] sm:$0xff] }
  0x10   :  { %v34_v39 = vld [vmem:[%s1749_s1 + $0x3c0] sm:$0xff]  ;;  %v128_v49 = vld [vmem:[%s1749_s1 + $0x3c8] sm:$0xff]  ;;  %v228_v11 = vld [vmem:[%s1749_s1 + $0x1d0] sm:$0xff] }
  0x11   :  { %1050 = vmatpush3.bf16.msra.mxu0 %v1049_v21  ;;  %1074 = vmatpush3.bf16.msra.mxu1 %v1073_v30  ;;  %v1061_v40 = vpack.c.bf16 %v34_v39, %v33_v38  ;;  %v1354_v41 = vld [vmem:[%s1750_s0] sm:$0xff]  ;;  %v1085_v50 = vpack.c.bf16 %v128_v49, %v127_v48  ;;  %v1101_v12 = vpack.c.bf16 %v228_v11, %v225_v10  ;;  %v232_v13 = vld [vmem:[%s1749_s1 + $0x218] sm:$0xff]  ;;  %v231_v16 = vld [vmem:[%s1749_s1 + $0x210] sm:$0xff] }
  0x12   :  { %1051 = vmatprep.subr.bf16.mxu0 %v1232_v0  ;;  %1075 = vmatprep.subr.bf16.mxu1 %v1232_v0  ;;  %v235_v14 = vld [vmem:[%s1749_s1 + $0x258] sm:$0xff]  ;;  %v234_v17 = vld [vmem:[%s1749_s1 + $0x250] sm:$0xff]  ;;  %v721_v19 = vld [vmem:[%s1751_s2] ss:$0 sm:$0xff] }
  0x13   :  { %v1103_v15 = vpack.c.bf16 %v235_v14, %v232_v13  ;;  %v1105_v18 = vpack.c.bf16 %v234_v17, %v231_v16  ;;  %v209_v23 = vld [vmem:[%s1749_s1 + $0x20] sm:$0xff]  ;;  %v238_v39 = vld [vmem:[%s1749_s1 + $0x298] sm:$0xff]  ;;  %v237_v43 = vld [vmem:[%s1749_s1 + $0x290] sm:$0xff] }
  0x14   :  { %v212_v24 = vld [vmem:[%s1749_s1 + $0x60] sm:$0xff]  ;;  %v244_v49 = vld [vmem:[%s1749_s1 + $0x318] sm:$0xff]  ;;  %v243_v51 = vld [vmem:[%s1749_s1 + $0x310] sm:$0xff] }
  0x15   :  { %1053 = vmatpush3.bf16.msra.mxu0 %v1052_v27  ;;  %1077 = vmatpush3.bf16.msra.mxu1 %v1076_v36  ;;  %v1120_v25 = vpack.c.bf16 %v212_v24, %v209_v23  ;;  %v215_v26 = vld [vmem:[%s1749_s1 + $0xa0] sm:$0xff]  ;;  %v246_v53 = vld [vmem:[%s1749_s1 + $0x350] sm:$0xff]  ;;  %v250_v58 = vld [vmem:[%s1749_s1 + $0x398] sm:$0xff] }
  0x16   :  { %1054 = vmatprep.subr.bf16.mxu0 %v1232_v0  ;;  %1078 = vmatprep.subr.bf16.mxu1 %v1232_v0  ;;  %v218_v27 = vld [vmem:[%s1749_s1 + $0xe0] sm:$0xff]  ;;  %v253_v59 = vld [vmem:[%s1749_s1 + $0x3d8] sm:$0xff]  ;;  %v423_v10 = vld [vmem:[%s1749_s1 + $0x68] sm:$0xff] }
  0x17   :  { %v1123_v29 = vpack.c.bf16 %v218_v27, %v215_v26  ;;  %v221_v30 = vld [vmem:[%s1749_s1 + $0x120] sm:$0xff]  ;;  %v1115_v61 = vpack.c.bf16 %v253_v59, %v250_v58  ;;  %v425_v13 = vld [vmem:[%s1749_s1 + $0xe8] sm:$0xff] }
  0x18   :  { %v224_v31 = vld [vmem:[%s1749_s1 + $0x160] sm:$0xff]  ;;  %v426_v16 = vld [vmem:[%s1749_s1 + $0x128] sm:$0xff] }
  0x19   :  { %1056 = vmatpush3.bf16.msra.mxu0 %v1055_v33  ;;  %1080 = vmatpush3.bf16.msra.mxu1 %v1079_v44  ;;  %v1126_v32 = vpack.c.bf16 %v224_v31, %v221_v30  ;;  %v227_v33 = vld [vmem:[%s1749_s1 + $0x1a0] sm:$0xff]  ;;  %v240_v44 = vld [vmem:[%s1749_s1 + $0x2d0] sm:$0xff]  ;;  %v427_v17 = vld [vmem:[%s1749_s1 + $0x168] sm:$0xff] }
  0x1a   :  { %1057 = vmatprep.subr.bf16.mxu0 %v1232_v0  ;;  %1081 = vmatprep.subr.bf16.mxu1 %v1232_v0  ;;  %v230_v34 = vld [vmem:[%s1749_s1 + $0x1e0] sm:$0xff]  ;;  %v1109_v46 = vpack.c.bf16 %v240_v44, %v237_v43  ;;  %v430_v23 = vld [vmem:[%s1749_s1 + $0x228] sm:$0xff]  ;;  %v521_v43 = vld [vmem:[%s1749_s1 + $0x170] sm:$0xff] }
  0x1b   :  { %v1129_v35 = vpack.c.bf16 %v230_v34, %v227_v33  ;;  %v233_v36 = vld [vmem:[%s1749_s1 + $0x220] sm:$0xff]  ;;  %v431_v24 = vld [vmem:[%s1749_s1 + $0x268] sm:$0xff] }
  0x1c   :  { %v239_v45 = vld [vmem:[%s1749_s1 + $0x2a0] sm:$0xff]  ;;  %v432_v26 = vld [vmem:[%s1749_s1 + $0x2a8] sm:$0xff] }
  0x1d   :  { %1059 = vmatpush3.bf16.msra.mxu0 %v1058_v37  ;;  %1083 = vmatpush3.bf16.msra.mxu1 %v1082_v47  ;;  %v236_v37 = vld [vmem:[%s1749_s1 + $0x260] sm:$0xff]  ;;  %v433_v27 = vld [vmem:[%s1749_s1 + $0x2e8] sm:$0xff] }
  0x1e   :  { %1060 = vmatprep.subr.bf16.mxu0 %v1232_v0  ;;  %1084 = vmatprep.subr.bf16.mxu1 %v1232_v0  ;;  %v1132_v38 = vpack.c.bf16 %v236_v37, %v233_v36  ;;  %v242_v47 = vld [vmem:[%s1749_s1 + $0x2e0] sm:$0xff]  ;;  %v435_v30 = vld [vmem:[%s1749_s1 + $0x368] sm:$0xff]  ;;  %v517_v36 = vld [vmem:[%s1749_s1 + $0x70] sm:$0xff] }
  0x1f   :  { %v1135_v48 = vpack.c.bf16 %v242_v47, %v239_v45  ;;  %v248_v55 = vld [vmem:[%s1749_s1 + $0x360] sm:$0xff]  ;;  %v437_v33 = vld [vmem:[%s1749_s1 + $0x3e8] sm:$0xff]  ;;  %v518_v37 = vld [vmem:[%s1749_s1 + $0xb0] sm:$0xff] }
  0x20   :  { %v251_v63 = vld [vmem:[%s1749_s1 + $0x3a0] sm:$0xff]  ;;  %v522_v45 = vld [vmem:[%s1749_s1 + $0x1b0] sm:$0xff] }
  0x21   :  { %1062 = vmatpush3.bf16.msra.mxu0 %v1061_v40  ;;  %1086 = vmatpush3.bf16.msra.mxu1 %v1085_v50  ;;  %v241_v40 = vld [vmem:[%s1749_s1 + $0x2d8] sm:$0xff]  ;;  %v254_v1 = vld [vmem:[%s1749_s1 + $0x3e0] sm:$0xff] }
  0x22   :  { %1119 = vmatprep.subr.bf16.mxu1 %v1232_v0  ;;  %1088 = vmatprep.subr.bf16.mxu0 %v1087_v54  ;;  %v1107_v42 = vpack.c.bf16 %v241_v40, %v238_v39  ;;  %v247_v50 = vld [vmem:[%s1749_s1 + $0x358] sm:$0xff]  ;;  %v245_v54 = vld [vmem:[%s1749_s1 + $0x320] sm:$0xff]  ;;  %v1141_v3 = vpack.c.bf16 %v254_v1, %v251_v63  ;;  %v519_v39 = vld [vmem:[%s1749_s1 + $0xf0] sm:$0xff] }
  0x23   :  { %v1111_v52 = vpack.c.bf16 %v247_v50, %v244_v49  ;;  %v1138_v57 = vpack.c.bf16 %v248_v55, %v245_v54  ;;  %v722_v5 = vld [vmem:[%s1751_s2 + $0x1] ss:$0 sm:$0xff]  ;;  %v1171_v40 = vpack.c.bf16 %v519_v39, %v518_v37  ;;  %v525_v49 = vld [vmem:[%s1749_s1 + $0x270] sm:$0xff]  ;;  %v255_v55 = vld [vmem:[%s1751_s2 + $0x2] sm:$0x7] }
  0x24   :  { %862 = vmatmul.mubr.f32.vlgmr.msra.gmra.mrb[0].mxu0 %v1354_v41  ;;  %v723_v37 = vld [vmem:[%s1751_s2 + $0x5] ss:$0 sm:$0xff] }
  0x25   :  { %336 = vmatprep.mubr.f32.mxu0 %v1234_v4  ;;  %1090 = vmatpush1.bf16.msra.mxu0 %v1089_v56  ;;  %v1113_v56 = vpack.c.bf16 %v246_v53, %v243_v51  ;;  %v15_v51 = vlaneseq }
  0x26   :  { %1092 = vmatprep.subr.bf16.mxu0 %v1091_v60  ;;  %v249_v60 = vld [vmem:[%s1749_s1 + $0x390] sm:$0xff] }
  0x29   :  { %1094 = vmatpush1.bf16.msra.mxu0 %v1093_v62  ;;  %v252_v62 = vld [vmem:[%s1749_s1 + $0x3d0] sm:$0xff] }
  0x2a   :  { %1096 = vmatprep.subr.bf16.mxu0 %v1095_v2  ;;  %v1117_v2 = vpack.c.bf16 %v252_v62, %v249_v60 }
  0x2d   :  { %1098 = vmatpush1.bf16.msra.mxu0 %v1097_v6 }
  0x2e   :  { %1100 = vmatprep.subr.bf16.mxu0 %v1099_v9  ;;  %v422_v9 = vld [vmem:[%s1749_s1 + $0x28] sm:$0xff] }
  0x2f   :  { %v1144_v11 = vpack.c.bf16 %v423_v10, %v422_v9  ;;  %v1650_v10 = vand.u32 127, %v15_v51 }
  0x31   :  { %1102 = vmatpush1.bf16.msra.mxu0 %v1101_v12  ;;  %v424_v12 = vld [vmem:[%s1749_s1 + $0xa8] sm:$0xff]  ;;  %vm17_vm1 = vcmp.ge.s32.totalorder %v1650_v10, 64  ;;  %vm703_vm2 = vcmp.ge.s32.totalorder %v1650_v10, 96  ;;  %vm704_vm3 = vcmp.lt.s32.totalorder %v1650_v10, 118 }
  0x32   :  { %1104 = vmatprep.subr.bf16.mxu0 %v1103_v15  ;;  %v1147_v15 = vpack.c.bf16 %v425_v13, %v424_v12  ;;  %vm705_vm4 = vmand %vm703_vm2, %vm704_vm3 }
  0x35   :  { %1106 = vmatpush1.bf16.msra.mxu0 %v1105_v18  ;;  %v1150_v18 = vpack.c.bf16 %v427_v17, %v426_v16  ;;  %v529_v17 = vld [vmem:[%s1749_s1 + $0x370] sm:$0xff] }
  0x36   :  { %1108 = vmatprep.subr.bf16.mxu0 %v1107_v42  ;;  %v520_v42 = vld [vmem:[%s1749_s1 + $0x130] sm:$0xff] }
  0x37   :  { %v1174_v44 = vpack.c.bf16 %v521_v43, %v520_v42  ;;  %v620_v43 = vld [vmem:[%s1749_s1 + $0x2b8] sm:$0xff] }
  0x39   :  { %1110 = vmatpush1.bf16.msra.mxu0 %v1109_v46  ;;  %v523_v46 = vld [vmem:[%s1749_s1 + $0x1f0] sm:$0xff] }
  0x3a   :  { %1112 = vmatprep.subr.bf16.mxu0 %v1111_v52  ;;  %v1177_v47 = vpack.c.bf16 %v523_v46, %v522_v45  ;;  %v258_v52 = vshrl.u32 %v15_v51, 7  ;;  %v622_v46 = vld [vmem:[%s1749_s1 + $0x338] sm:$0xff] }
  0x3c   :  { %v259_v53 = vsub.s32 0, %v258_v52  ;;  %v267_v54 = vsub.s32 2, %v258_v52 }
  0x3d   :  { %1114 = vmatpush1.bf16.msra.mxu0 %v1113_v56  ;;  %v263_v56 = vsub.s32 1, %v258_v52  ;;  %v724_v52 = vld [vmem:[%s1751_s2 + $0x6] ss:$0 sm:$0xff] }
  0x3e   :  { %1116 = vmatprep.subr.bf16.mxu0 %v1115_v61  ;;  %v268_v58 = vrot.slane %v255_v55, %v267_v54 }
  0x3f   :  { %v264_v59 = vrot.slane %v255_v55, %v263_v56 }
  0x41   :  { %1118 = vmatpush1.bf16.msra.mxu0 %v1117_v2 }
  0x42   :  { %1143 = vmatprep.subr.bf16.mxu0 %v1232_v0 }
  0xf7   :  { %v108_v20 = vpop.f32.mrb[0].mxu0 }
  0xf8   :  { %v1442_v21 = vadd.f32 %v721_v19, %v108_v20  ;;  %v863_v22 = vpop.f32.mrb[1].mxu0  ;;  %v428_v19 = vld [vmem:[%s1749_s1 + $0x1a8] sm:$0xff] }
  0xf9   :  { %v429_v20 = vld [vmem:[%s1749_s1 + $0x1e8] sm:$0xff] }
  0xfa   :  { %1218 = vtanh.f32 %v1442_v21  ;;  %v1153_v22 = vpack.c.bf16 %v429_v20, %v428_v19  ;;  %v531_v19 = vld [vmem:[%s1749_s1 + $0x3f0] sm:$0xff] }
 0x104   :  { %v1219_v28 = vpop.eup %1218 }
 0x105   :  { %897 = vmatmul.mubr.f32.vlgmr.msra.gmra.mrb[0].mxu1 %v1219_v28  ;;  %v1159_v28 = vpack.c.bf16 %v433_v27, %v432_v26  ;;  %v613_v26 = vld [vmem:[%s1749_s1 + $0xf8] sm:$0xff] }
 0x106   :  { %1121 = vmatpush3.bf16.msra.mxu1 %v1120_v25  ;;  %931 = vmatprep.mubr.msk.f32.mxu1 %vm1233_vm0, %v1234_v4  ;;  %v1156_v25 = vpack.c.bf16 %v431_v24, %v430_v23  ;;  %v611_v23 = vld [vmem:[%s1749_s1 + $0x78] sm:$0xff] }
 0x107   :  { %1122 = vmatprep.subr.bf16.mxu1 %v1232_v0  ;;  %v612_v24 = vld [vmem:[%s1749_s1 + $0xb8] sm:$0xff] }
 0x108   :  { %v1195_v27 = vpack.c.bf16 %v613_v26, %v612_v24 }
 0x10a   :  { %1124 = vmatpush3.bf16.msra.mxu1 %v1123_v29  ;;  %v434_v29 = vld [vmem:[%s1749_s1 + $0x328] sm:$0xff] }
 0x10b   :  { %1125 = vmatprep.subr.bf16.mxu1 %v1232_v0  ;;  %v1162_v31 = vpack.c.bf16 %v435_v30, %v434_v29  ;;  %v615_v29 = vld [vmem:[%s1749_s1 + $0x178] sm:$0xff] }
 0x10e   :  { %1127 = vmatpush3.bf16.msra.mxu1 %v1126_v32  ;;  %v436_v32 = vld [vmem:[%s1749_s1 + $0x3a8] sm:$0xff] }
 0x10f   :  { %1128 = vmatprep.subr.bf16.mxu1 %v1232_v0  ;;  %v1165_v34 = vpack.c.bf16 %v437_v33, %v436_v32  ;;  %v617_v32 = vld [vmem:[%s1749_s1 + $0x1f8] sm:$0xff] }
 0x112   :  { %1130 = vmatpush3.bf16.msra.mxu1 %v1129_v35  ;;  %v516_v35 = vld [vmem:[%s1749_s1 + $0x30] sm:$0xff] }
 0x113   :  { %1131 = vmatprep.subr.bf16.mxu1 %v1232_v0 }
 0x116   :  { %1133 = vmatpush3.bf16.msra.mxu1 %v1132_v38  ;;  %v1168_v38 = vpack.c.bf16 %v517_v36, %v516_v35  ;;  %v619_v35 = vld [vmem:[%s1749_s1 + $0x278] sm:$0xff] }
 0x117   :  { %1134 = vmatprep.subr.bf16.mxu1 %v1232_v0 }
 0x11a   :  { %1136 = vmatpush3.bf16.msra.mxu1 %v1135_v48  ;;  %v524_v48 = vld [vmem:[%s1749_s1 + $0x230] sm:$0xff] }
 0x11b   :  { %1137 = vmatprep.subr.bf16.mxu1 %v1232_v0  ;;  %v1180_v50 = vpack.c.bf16 %v525_v49, %v524_v48  ;;  %v624_v49 = vld [vmem:[%s1749_s1 + $0x3b8] sm:$0xff] }
 0x11e   :  { %1139 = vmatpush3.bf16.msra.mxu1 %v1138_v57  ;;  %v260_v57 = vrot.slane %v255_v55, %v259_v53 }
 0x11f   :  { %1140 = vmatprep.subr.bf16.mxu1 %v1232_v0 }
 0x122   :  { %1142 = vmatpush3.bf16.msra.mxu1 %v1141_v3 }
 0x123   :  { %1167 = vmatprep.subr.bf16.mxu1 %v1232_v0 }
 0x1d8   :  { %v202_v6 = vpop.f32.mrb[0].mxu1 }
 0x1d9   :  { %v203_v7 = vadd.f32 %v722_v5, %v202_v6  ;;  %v898_v8 = vpop.f32.mrb[1].mxu1 }
 0x1db   :  { %1220 = vtanh.f32 %v203_v7 }
 0x1e5   :  { %v1555_v14 = vpop.eup %1220 }
 0x1e6   :  { %337 = vmatmul.mubr.f32.vlgmr.msra.gmra.mrb[2].mxu0 %v1555_v14  ;;  %932 = vmatmul.mubr.f32.vlgmr.msra.gmra.mrb[2].mxu1 %v1555_v14  ;;  %v413_v63 = vadd.f32 %v1555_v14, %v1442_v21  ;;  %v526_v14 = vld [vmem:[%s1749_s1 + $0x2b0] sm:$0xff] }
 0x1e7   :  { %1145 = vmatpush3.bf16.msra.mxu0 %v1144_v11  ;;  %966 = vmatprep.mubr.msk.f32.mxu0 %vm1233_vm0, %v1234_v4  ;;  %v18_v11 = vsel %vm17_vm1, %v1354_v41, 0.0  ;;  %v528_v41 = vld [vmem:[%s1749_s1 + $0x330] sm:$0xff] }
 0x1e8   :  { %1146 = vmatprep.subr.bf16.mxu0 %v1232_v0  ;;  %1001 = vmatprep.mubr.msk.f32.mxu1 %vm1233_vm0, %v1234_v4 }
 0x1e9   :  { %1169 = vmatpush3.bf16.msra.mxu1 %v1168_v38 }
 0x1ea   :  { %1170 = vmatprep.subr.bf16.mxu1 %v1232_v0 }
 0x1eb   :  { %1148 = vmatpush3.bf16.msra.mxu0 %v1147_v15  ;;  %v527_v15 = vld [vmem:[%s1749_s1 + $0x2f0] sm:$0xff] }
 0x1ec   :  { %1149 = vmatprep.subr.bf16.mxu0 %v1232_v0  ;;  %v1183_v16 = vpack.c.bf16 %v527_v15, %v526_v14 }
 0x1ed   :  { %1172 = vmatpush3.bf16.msra.mxu1 %v1171_v40 }
 0x1ee   :  { %1173 = vmatprep.subr.bf16.mxu1 %v1232_v0 }
 0x1ef   :  { %1151 = vmatpush3.bf16.msra.mxu0 %v1150_v18  ;;  %v530_v18 = vld [vmem:[%s1749_s1 + $0x3b0] sm:$0xff] }
 0x1f0   :  { %1152 = vmatprep.subr.bf16.mxu0 %v1232_v0  ;;  %v1189_v20 = vpack.c.bf16 %v531_v19, %v530_v18 }
 0x1f1   :  { %1175 = vmatpush3.bf16.msra.mxu1 %v1174_v44  ;;  %v621_v44 = vld [vmem:[%s1749_s1 + $0x2f8] sm:$0xff] }
 0x1f2   :  { %1176 = vmatprep.subr.bf16.mxu1 %v1232_v0  ;;  %v1207_v45 = vpack.c.bf16 %v621_v44, %v620_v43 }
 0x1f3   :  { %1154 = vmatpush3.bf16.msra.mxu0 %v1153_v22  ;;  %v610_v22 = vld [vmem:[%s1749_s1 + $0x38] sm:$0xff] }
 0x1f4   :  { %1155 = vmatprep.subr.bf16.mxu0 %v1232_v0 }
 0x1f5   :  { %1178 = vmatpush3.bf16.msra.mxu1 %v1177_v47  ;;  %v623_v47 = vld [vmem:[%s1749_s1 + $0x378] sm:$0xff] }
 0x1f6   :  { %1179 = vmatprep.subr.bf16.mxu1 %v1232_v0  ;;  %v1210_v48 = vpack.c.bf16 %v623_v47, %v622_v46 }
 0x1f7   :  { %1157 = vmatpush3.bf16.msra.mxu0 %v1156_v25  ;;  %v1192_v25 = vpack.c.bf16 %v611_v23, %v610_v22 }
 0x1f8   :  { %1158 = vmatprep.subr.bf16.mxu0 %v1232_v0 }
 0x1f9   :  { %1181 = vmatpush3.bf16.msra.mxu1 %v1180_v50  ;;  %v625_v50 = vld [vmem:[%s1749_s1 + $0x3f8] sm:$0xff] }
 0x1fa   :  { %1182 = vmatprep.subr.bf16.mxu1 %v1232_v0  ;;  %v1213_v51 = vpack.c.bf16 %v625_v50, %v624_v49 }
 0x1fb   :  { %1160 = vmatpush3.bf16.msra.mxu0 %v1159_v28  ;;  %v614_v28 = vld [vmem:[%s1749_s1 + $0x138] sm:$0xff] }
 0x1fc   :  { %1161 = vmatprep.subr.bf16.mxu0 %v1232_v0  ;;  %v1198_v30 = vpack.c.bf16 %v615_v29, %v614_v28 }
 0x1fd   :  { %1184 = vmatpush3.bf16.msra.mxu1 %v1183_v16 }
 0x1fe   :  { %1185 = vmatprep.subr.bf16.mxu1 %v1232_v0 }
 0x1ff   :  { %1163 = vmatpush3.bf16.msra.mxu0 %v1162_v31  ;;  %v616_v31 = vld [vmem:[%s1749_s1 + $0x1b8] sm:$0xff] }
 0x200   :  { %1164 = vmatprep.subr.bf16.mxu0 %v1232_v0  ;;  %v1201_v33 = vpack.c.bf16 %v617_v32, %v616_v31 }
 0x203   :  { %1166 = vmatpush3.bf16.msra.mxu0 %v1165_v34  ;;  %v618_v34 = vld [vmem:[%s1749_s1 + $0x238] sm:$0xff] }
 0x204   :  { %1191 = vmatprep.subr.bf16.mxu0 %v1232_v0  ;;  %v1204_v36 = vpack.c.bf16 %v619_v35, %v618_v34 }
 0x2b9   :  { %v338_v60 = vpop.f32.mrb[2].mxu0  ;;  %v409_v61 = vpop.f32.mrb[2].mxu1 }
 0x2ba   :  { %v339_v62 = vadd.f32 %v338_v60, %v260_v57  ;;  %v410_v1 = vadd.f32 %v409_v61, %v268_v58  ;;  %v340_v2 = vpop.f32.mrb[3].mxu0  ;;  %v933_v3 = vpop.f32.mrb[3].mxu1  ;;  %v725_v57 = vld [vmem:[%s1751_s2 + $0x7] ss:$0 sm:$0xff] }
 0x2bb   :  { %v341_v5 = vadd.f32 %v340_v2, %v264_v59 }
 0x2bc   :  { %v414_v6 = vadd.f32 %v413_v63, %v339_v62  ;;  %v417_v7 = vmul.f32 0.5, %v410_v1 }
 0x2be   :  { %v418_v8 = vmul.f32 1.442695, %v417_v7  ;;  %v415_v9 = vadd.f32 %v414_v6, %v341_v5 }
 0x2c0   :  { %1222 = vpow2.f32 %v418_v8  ;;  %416 = vst [vmem:[%s1752_s3] sm:$0xff] %v415_v9 }
 0x2ca   :  { %v1223_v21 = vpop.eup %1222 }
 0x2cb   :  { %v420_v12 = vmul.f32 %v1223_v21, %v18_v11 }
 0x2cd   :  { %v1654_v13 = vadd.f32 %v420_v12, %v339_v62 }
 0x2cf   :  { %967 = vmatmul.mubr.f32.vlgmr.msra.gmra.mrb[4].mxu0 %v1654_v13 }
 0x2d0   :  { %1036 = vmatprep.mubr.msk.f32.mxu0 %vm1233_vm0, %v1234_v4  ;;  %v1186_v4 = vpack.c.bf16 %v529_v17, %v528_v41  ;;  %1193 = vmatpush3.bf16.msra.mxu0 %v1192_v25 }
 0x2d1   :  { %1194 = vmatprep.subr.bf16.mxu0 %v1232_v0 }
 0x2d2   :  { %1187 = vmatpush3.bf16.msra.mxu1 %v1186_v4 }
 0x2d3   :  { %1188 = vmatprep.subr.bf16.mxu1 %v1232_v0 }
 0x2d4   :  { %1196 = vmatpush3.bf16.msra.mxu0 %v1195_v27 }
 0x2d5   :  { %1197 = vmatprep.subr.bf16.mxu0 %v1232_v0 }
 0x2d6   :  { %1190 = vmatpush3.bf16.msra.mxu1 %v1189_v20 }
 0x2d8   :  { %1199 = vmatpush3.bf16.msra.mxu0 %v1198_v30 }
 0x2d9   :  { %1200 = vmatprep.subr.bf16.mxu0 %v1232_v0 }
 0x2dc   :  { %1202 = vmatpush3.bf16.msra.mxu0 %v1201_v33 }
 0x2dd   :  { %1203 = vmatprep.subr.bf16.mxu0 %v1232_v0 }
 0x2e0   :  { %1205 = vmatpush3.bf16.msra.mxu0 %v1204_v36 }
 0x2e1   :  { %1206 = vmatprep.subr.bf16.mxu0 %v1232_v0 }
 0x2e4   :  { %1208 = vmatpush3.bf16.msra.mxu0 %v1207_v45 }
 0x2e5   :  { %1209 = vmatprep.subr.bf16.mxu0 %v1232_v0 }
 0x2e8   :  { %1211 = vmatpush3.bf16.msra.mxu0 %v1210_v48 }
 0x2e9   :  { %1212 = vmatprep.subr.bf16.mxu0 %v1232_v0 }
 0x2ec   :  { %1214 = vmatpush3.bf16.msra.mxu0 %v1213_v51 }
 0x3a2   :  { %v511_v38 = vpop.f32.mrb[4].mxu0 }
 0x3a3   :  { %v512_v39 = vadd.f32 %v723_v37, %v511_v38  ;;  %v968_v40 = vpop.f32.mrb[5].mxu0 }
 0x3a5   :  { %1224 = vtanh.f32 %v512_v39 }
 0x3af   :  { %v1225_v42 = vpop.eup %1224 }
 0x3b0   :  { %1002 = vmatmul.mubr.f32.vlgmr.msra.gmra.mrb[4].mxu1 %v1225_v42 }
 0x483   :  { %v605_v53 = vpop.f32.mrb[4].mxu1 }
 0x484   :  { %v606_v54 = vadd.f32 %v724_v52, %v605_v53  ;;  %v1003_v55 = vpop.f32.mrb[5].mxu1 }
 0x486   :  { %1226 = vtanh.f32 %v606_v54  ;;  %v713_v63 = vadd.f32 %v606_v54, %v512_v39 }
 0x488   :  { %v714_v2 = vadd.f32 %v713_v63, %v1654_v13 }
 0x490   :  { %v1227_v56 = vpop.eup %1226 }
 0x491   :  { %1037 = vmatmul.mubr.f32.vlgmr.msra.gmra.mrb[6].mxu0 %v1227_v56 }
 0x564   :  { %v699_v58 = vpop.f32.mrb[6].mxu0 }
 0x565   :  { %v700_v59 = vadd.f32 %v725_v57, %v699_v58  ;;  %v1038_v60 = vpop.f32.mrb[7].mxu0 }
 0x567   :  { %v726_v61 = vmul.f32 -1.442695, %v700_v59 }
 0x569   :  { %1228 = vpow2.f32 %v726_v61 }
 0x573   :  { %v1229_v0 = vpop.eup %1228 }
 0x574   :  { %v709_v62 = vadd.f32 1.0, %v1229_v0 }
 0x576   :  { %1230 = vrcp.f32 %v709_v62 }
 0x580   :  { %v1231_v1 = vpop.eup %1230 }
 0x581   :  { %v712_v3 = vsel %vm705_vm4, %v1231_v1, 0.0 }
 0x582   :  { %v715_v5 = vadd.f32 %v714_v2, %v712_v3 }
 0x584   :  { %716 = vst [vmem:[%s1752_s3 + $0x8] sm:$0xff] %v715_v5 }

</bundles_post_ra>
